<compile_context>
chip_gen: v7x
topology: tpu7x:2x2x1
jax: 0.10.0
libtpu: 0.0.40
codegen_flags: <defaults>
</compile_context>

<pallas_src>
import functools

import jax
import jax.numpy as jnp
from jax.experimental import pallas as pl
from jax.experimental.pallas import tpu as pltpu


def _round_up(x, m):
    return (x + m - 1) // m * m


# ----------------------------------------------------------------------------- kernel
def decoder_kernel(z_ref,
                   w5_ref, c5_ref,
                   w6_ref, c6_ref,
                   w7_ref, c7_ref,
                   w8_ref, c8_ref,
                   out_ref):
    # Layer 5: Linear + (folded) BatchNorm + ReLU     (Dropout = identity)
    h = jnp.dot(z_ref[...].astype(jnp.bfloat16), w5_ref[...],
                preferred_element_type=jnp.float32)
    h = jnp.maximum(h + c5_ref[...], 0.0)

    # Layer 6
    h = jnp.dot(h.astype(jnp.bfloat16), w6_ref[...],
                preferred_element_type=jnp.float32)
    h = jnp.maximum(h + c6_ref[...], 0.0)

    # Layer 7
    h = jnp.dot(h.astype(jnp.bfloat16), w7_ref[...],
                preferred_element_type=jnp.float32)
    h = jnp.maximum(h + c7_ref[...], 0.0)

    # Layer 8: Linear + ReLU
    y = jnp.dot(h.astype(jnp.bfloat16), w8_ref[...],
                preferred_element_type=jnp.float32)
    out_ref[...] = jnp.maximum(y + c8_ref[...], 0.0)


# ------------------------------------------------------------------- param preparation
def init_params(key, x_dim, h_dim1, h_dim2, h_dim3, z_dim):
    """PyTorch-default init: Linear U(+-1/sqrt(fan_in)); BN gamma=1, beta=0, mean=0, var=1.

    Weights are stored (in_features, out_features) so the kernel computes x @ W.
    """
    params = {}
    dims = [(z_dim, h_dim3, "5"), (h_dim3, h_dim2, "6"),
            (h_dim2, h_dim1, "7"), (h_dim1, x_dim, "8")]
    for fan_in, fan_out, tag in dims:
        key, kw, kb = jax.random.split(key, 3)
        bound = 1.0 / jnp.sqrt(fan_in)
        params[f"w{tag}"] = jax.random.uniform(
            kw, (fan_in, fan_out), jnp.float32, -bound, bound)
        params[f"b{tag}"] = jax.random.uniform(
            kb, (fan_out,), jnp.float32, -bound, bound)
        if tag != "8":  # layers 5, 6, 7 carry BatchNorm1d
            params[f"g{tag}"] = jnp.ones((fan_out,), jnp.float32)
            params[f"be{tag}"] = jnp.zeros((fan_out,), jnp.float32)
            params[f"m{tag}"] = jnp.zeros((fan_out,), jnp.float32)
            params[f"v{tag}"] = jnp.ones((fan_out,), jnp.float32)
    return params


def fold_decoder_params(params, eps=1e-5):
    """One-time fold: BN(eval) + bias into the weights; bf16 weights; lane-pad hiddens.

    Per layer:  y = relu(x @ (W * scale) + (b*scale + shift))   with
    scale = gamma/sqrt(var+eps), shift = beta - mean*scale  (scale=1, shift=0 for layer 8).
    Intermediate output widths are zero-padded to multiples of 128; padded columns
    produce exactly 0 after ReLU and the matching padded input rows of the next weight
    are zero, so the result is bit-for-bit unaffected.
    """
    def bn_fold(tag):
        scale = params[f"g{tag}"] * jax.lax.rsqrt(params[f"v{tag}"] + eps)
        shift = params[f"be{tag}"] - params[f"m{tag}"] * scale
        return scale, shift

    ws, cs = [], []
    for tag in ("5", "6", "7"):
        s, sh = bn_fold(tag)
        ws.append(params[f"w{tag}"] * s[None, :])
        cs.append(params[f"b{tag}"] * s + sh)
    ws.append(params["w8"])
    cs.append(params["b8"])

    # Pad intermediate widths (outputs of layers 5..7) up to lane multiples of 128.
    for li in range(3):
        f = ws[li].shape[1]
        fp = _round_up(f, 128)
        if fp != f:
            pad = fp - f
            ws[li] = jnp.pad(ws[li], ((0, 0), (0, pad)))
            cs[li] = jnp.pad(cs[li], (0, pad))
            ws[li + 1] = jnp.pad(ws[li + 1], ((0, pad), (0, 0)))

    folded = {}
    for i, tag in enumerate(("5", "6", "7", "8")):
        folded[f"w{tag}"] = ws[i].astype(jnp.bfloat16)          # bf16 for MXU
        folded[f"c{tag}"] = cs[i].astype(jnp.float32)[None, :]   # (1, F) f32 lane vector
    return folded


# -------------------------------------------------------------------------- entry point
def custom_decoder_forward(z, folded, *, b_blk=256):
    """Fused decoder forward.  z: (B, z_dim) f32, folded: output of fold_decoder_params."""
    B, z_dim = z.shape
    x_dim = folded["w8"].shape[1]

    # Batch block: multiple of 8 sublanes, capped by (padded) batch size.
    b_blk = max(8, min(_round_up(b_blk, 8), _round_up(B, 8)))
    Bp = _round_up(B, b_blk)
    if Bp != B:
        z = jnp.pad(z, ((0, Bp - B), (0, 0)))
    grid = (Bp // b_blk,)

    def resident(arr):  # weights / biases: same block every grid step -> stay in VMEM
        return pl.BlockSpec(arr.shape, lambda i: (0, 0))

    args = (z,
            folded["w5"], folded["c5"],
            folded["w6"], folded["c6"],
            folded["w7"], folded["c7"],
            folded["w8"], folded["c8"])

    in_specs = [pl.BlockSpec((b_blk, z_dim), lambda i: (i, 0))] + \
               [resident(a) for a in args[1:]]
    out_specs = pl.BlockSpec((b_blk, x_dim), lambda i: (i, 0))

    h3 = folded["w5"].shape[1]
    h2 = folded["w6"].shape[1]
    h1 = folded["w7"].shape[1]
    flops = 2 * Bp * (z_dim * h3 + h3 * h2 + h2 * h1 + h1 * x_dim)
    bytes_accessed = (z.size * 4 + Bp * x_dim * 4 +
                      sum(int(folded[k].size) * folded[k].dtype.itemsize
                          for k in folded))

    out = pl.pallas_call(
        decoder_kernel,
        out_shape=jax.ShapeDtypeStruct((Bp, x_dim), jnp.float32),
        grid=grid,
        in_specs=in_specs,
        out_specs=out_specs,
        compiler_params=pltpu.CompilerParams(
            dimension_semantics=("parallel",)),
        cost_estimate=pl.CostEstimate(
            flops=flops, transcendentals=0, bytes_accessed=bytes_accessed),
    )(*args)

    return out[:B] if Bp != B else out


# ---------------------------------------------------------------------------- reference
def reference_forward(z, params):
    """Pure-JAX f32 reference (eval-mode PyTorch semantics)."""
    def bn(x, g, b, m, v, eps=1e-5):
        return (x - m) * jax.lax.rsqrt(v + eps) * g + b

    h = z @ params["w5"] + params["b5"]
    h = jax.nn.relu(bn(h, params["g5"], params["be5"], params["m5"], params["v5"]))
    h = h @ params["w6"] + params["b6"]
    h = jax.nn.relu(bn(h, params["g6"], params["be6"], params["m6"], params["v6"]))
    h = h @ params["w7"] + params["b7"]
    h = jax.nn.relu(bn(h, params["g7"], params["be7"], params["m7"], params["v7"]))
    return jax.nn.relu(h @ params["w8"] + params["b8"])


if __name__ == "__main__":
    # Small shapes consistent with the module: z -> h3 -> h2 -> h1 -> x
    B, z_dim, h_dim3, h_dim2, h_dim1, x_dim = 16, 32, 64, 128, 128, 256

    key = jax.random.PRNGKey(0)
    key, kz = jax.random.split(key)
    params = init_params(key, x_dim, h_dim1, h_dim2, h_dim3, z_dim)
    folded = fold_decoder_params(params)          # one-time fold, not per forward call
    z = jax.random.normal(kz, (B, z_dim), jnp.float32)

    # b_blk=8 so the batch grid (pipelined path) is actually exercised at this tiny B.
    fwd = jax.jit(functools.partial(custom_decoder_forward, b_blk=8))
    out = jax.block_until_ready(fwd(z, folded))

    ref = reference_forward(z, params)
    assert out.shape == (B, x_dim)
    # bf16 matmuls with f32 accumulation -> relaxed tolerance vs the f32 reference.
    assert jnp.allclose(out, ref, atol=5e-2, rtol=5e-2), (
        f"mismatch vs reference, max abs err={jnp.max(jnp.abs(out - ref))}")

    print("KERNEL_OK")
</pallas_src>

<mosaic_0001>
module attributes {stable_mosaic.version = 11 : i64} {
  func.func @decoder_kernel(%arg0: i32, %arg1: memref<8x32xf32, #tpu.memory_space<vmem>>, %arg2: memref<32x128xbf16, #tpu.memory_space<vmem>>, %arg3: memref<1x128xf32, #tpu.memory_space<vmem>>, %arg4: memref<128x128xbf16, #tpu.memory_space<vmem>>, %arg5: memref<1x128xf32, #tpu.memory_space<vmem>>, %arg6: memref<128x128xbf16, #tpu.memory_space<vmem>>, %arg7: memref<1x128xf32, #tpu.memory_space<vmem>>, %arg8: memref<128x256xbf16, #tpu.memory_space<vmem>>, %arg9: memref<1x256xf32, #tpu.memory_space<vmem>>, %arg10: memref<8x256xf32, #tpu.memory_space<vmem>>) attributes {dimension_semantics = [#tpu.dimension_semantics<parallel>], iteration_bounds = array<i64: 2>, scalar_prefetch = 0 : i64, scratch_operands = 0 : i64, tpu.core_type = #tpu.core_type<tc>, window_params = [{transform_indices = @transform_0, window_bounds = array<i64: 8, 32>}, {pipeline_mode = #tpu.pipeline_mode<synchronous>, transform_indices = @transform_1, window_bounds = array<i64: 32, 128>}, {pipeline_mode = #tpu.pipeline_mode<synchronous>, transform_indices = @transform_2, window_bounds = array<i64: 1, 128>}, {pipeline_mode = #tpu.pipeline_mode<synchronous>, transform_indices = @transform_3, window_bounds = array<i64: 128, 128>}, {pipeline_mode = #tpu.pipeline_mode<synchronous>, transform_indices = @transform_4, window_bounds = array<i64: 1, 128>}, {pipeline_mode = #tpu.pipeline_mode<synchronous>, transform_indices = @transform_5, window_bounds = array<i64: 128, 128>}, {pipeline_mode = #tpu.pipeline_mode<synchronous>, transform_indices = @transform_6, window_bounds = array<i64: 1, 128>}, {pipeline_mode = #tpu.pipeline_mode<synchronous>, transform_indices = @transform_7, window_bounds = array<i64: 128, 256>}, {pipeline_mode = #tpu.pipeline_mode<synchronous>, transform_indices = @transform_8, window_bounds = array<i64: 1, 256>}, {transform_indices = @transform_9, window_bounds = array<i64: 8, 256>}]} {
    %c0 = arith.constant 0 : index
    %c0_0 = arith.constant 0 : index
    %0 = vector.load %arg1[%c0, %c0_0] : memref<8x32xf32, #tpu.memory_space<vmem>>, vector<8x32xf32>
    %1 = arith.truncf %0 : vector<8x32xf32> to vector<8x32xbf16>
    %c0_1 = arith.constant 0 : index
    %c0_2 = arith.constant 0 : index
    %2 = vector.load %arg2[%c0_1, %c0_2] : memref<32x128xbf16, #tpu.memory_space<vmem>>, vector<32x128xbf16>
    %cst = arith.constant dense<0.000000e+00> : vector<8x128xf32>
    %3 = tpu.matmul %1, %2, %cst {dimension_numbers = #tpu.dot_dimension_numbers<[1], [0], [0], [1], [0, 0, 1, 1], [], []>} : vector<8x32xbf16>, vector<32x128xbf16>, vector<8x128xf32> -> vector<8x128xf32>
    %c0_3 = arith.constant 0 : index
    %c0_4 = arith.constant 0 : index
    %4 = vector.load %arg3[%c0_3, %c0_4] : memref<1x128xf32, #tpu.memory_space<vmem>>, vector<1x128xf32>
    %5 = vector.broadcast %4 : vector<1x128xf32> to vector<8x128xf32>
    %6 = arith.addf %3, %5 : vector<8x128xf32>
    %cst_5 = arith.constant 0.000000e+00 : f32
    %7 = vector.broadcast %cst_5 : f32 to vector<8x128xf32>
    %8 = arith.maximumf %6, %7 : vector<8x128xf32>
    %9 = arith.truncf %8 : vector<8x128xf32> to vector<8x128xbf16>
    %c0_6 = arith.constant 0 : index
    %c0_7 = arith.constant 0 : index
    %10 = vector.load %arg4[%c0_6, %c0_7] : memref<128x128xbf16, #tpu.memory_space<vmem>>, vector<128x128xbf16>
    %cst_8 = arith.constant dense<0.000000e+00> : vector<8x128xf32>
    %11 = tpu.matmul %9, %10, %cst_8 {dimension_numbers = #tpu.dot_dimension_numbers<[1], [0], [0], [1], [0, 0, 1, 1], [], []>} : vector<8x128xbf16>, vector<128x128xbf16>, vector<8x128xf32> -> vector<8x128xf32>
    %c0_9 = arith.constant 0 : index
    %c0_10 = arith.constant 0 : index
    %12 = vector.load %arg5[%c0_9, %c0_10] : memref<1x128xf32, #tpu.memory_space<vmem>>, vector<1x128xf32>
    %13 = vector.broadcast %12 : vector<1x128xf32> to vector<8x128xf32>
    %14 = arith.addf %11, %13 : vector<8x128xf32>
    %cst_11 = arith.constant 0.000000e+00 : f32
    %15 = vector.broadcast %cst_11 : f32 to vector<8x128xf32>
    %16 = arith.maximumf %14, %15 : vector<8x128xf32>
    %17 = arith.truncf %16 : vector<8x128xf32> to vector<8x128xbf16>
    %c0_12 = arith.constant 0 : index
    %c0_13 = arith.constant 0 : index
    %18 = vector.load %arg6[%c0_12, %c0_13] : memref<128x128xbf16, #tpu.memory_space<vmem>>, vector<128x128xbf16>
    %cst_14 = arith.constant dense<0.000000e+00> : vector<8x128xf32>
    %19 = tpu.matmul %17, %18, %cst_14 {dimension_numbers = #tpu.dot_dimension_numbers<[1], [0], [0], [1], [0, 0, 1, 1], [], []>} : vector<8x128xbf16>, vector<128x128xbf16>, vector<8x128xf32> -> vector<8x128xf32>
    %c0_15 = arith.constant 0 : index
    %c0_16 = arith.constant 0 : index
    %20 = vector.load %arg7[%c0_15, %c0_16] : memref<1x128xf32, #tpu.memory_space<vmem>>, vector<1x128xf32>
    %21 = vector.broadcast %20 : vector<1x128xf32> to vector<8x128xf32>
    %22 = arith.addf %19, %21 : vector<8x128xf32>
    %cst_17 = arith.constant 0.000000e+00 : f32
    %23 = vector.broadcast %cst_17 : f32 to vector<8x128xf32>
    %24 = arith.maximumf %22, %23 : vector<8x128xf32>
    %25 = arith.truncf %24 : vector<8x128xf32> to vector<8x128xbf16>
    %c0_18 = arith.constant 0 : index
    %c0_19 = arith.constant 0 : index
    %26 = vector.load %arg8[%c0_18, %c0_19] : memref<128x256xbf16, #tpu.memory_space<vmem>>, vector<128x256xbf16>
    %cst_20 = arith.constant dense<0.000000e+00> : vector<8x256xf32>
    %27 = tpu.matmul %25, %26, %cst_20 {dimension_numbers = #tpu.dot_dimension_numbers<[1], [0], [0], [1], [0, 0, 1, 1], [], []>} : vector<8x128xbf16>, vector<128x256xbf16>, vector<8x256xf32> -> vector<8x256xf32>
    %c0_21 = arith.constant 0 : index
    %c0_22 = arith.constant 0 : index
    %28 = vector.load %arg9[%c0_21, %c0_22] : memref<1x256xf32, #tpu.memory_space<vmem>>, vector<1x256xf32>
    %29 = vector.broadcast %28 : vector<1x256xf32> to vector<8x256xf32>
    %30 = arith.addf %27, %29 : vector<8x256xf32>
    %cst_23 = arith.constant 0.000000e+00 : f32
    %31 = vector.broadcast %cst_23 : f32 to vector<8x256xf32>
    %32 = arith.maximumf %30, %31 : vector<8x256xf32>
    %c0_24 = arith.constant 0 : index
    %c0_25 = arith.constant 0 : index
    %33 = vector.load %arg10[%c0_24, %c0_25] : memref<8x256xf32, #tpu.memory_space<vmem>>, vector<8x256xf32>
    tpu.vector_store %arg10[%c0_24, %c0_25], %32 {strides = array<i32>} : memref<8x256xf32, #tpu.memory_space<vmem>>, vector<8x256xf32>,
    return
  }
  func.func @transform_0(%arg0: i32) -> (i32, i32) {
    %c0_i32 = arith.constant 0 : i32
    %c0_i32_0 = arith.constant 0 : i32
    return %arg0, %c0_i32 : i32, i32
  }
  func.func @transform_1(%arg0: i32) -> (i32, i32) {
    %c0_i32 = arith.constant 0 : i32
    %c0_i32_0 = arith.constant 0 : i32
    %c0_i32_1 = arith.constant 0 : i32
    return %c0_i32, %c0_i32_0 : i32, i32
  }
  func.func @transform_2(%arg0: i32) -> (i32, i32) {
    %c0_i32 = arith.constant 0 : i32
    %c0_i32_0 = arith.constant 0 : i32
    %c0_i32_1 = arith.constant 0 : i32
    return %c0_i32, %c0_i32_0 : i32, i32
  }
  func.func @transform_3(%arg0: i32) -> (i32, i32) {
    %c0_i32 = arith.constant 0 : i32
    %c0_i32_0 = arith.constant 0 : i32
    %c0_i32_1 = arith.constant 0 : i32
    return %c0_i32, %c0_i32_0 : i32, i32
  }
  func.func @transform_4(%arg0: i32) -> (i32, i32) {
    %c0_i32 = arith.constant 0 : i32
    %c0_i32_0 = arith.constant 0 : i32
    %c0_i32_1 = arith.constant 0 : i32
    return %c0_i32, %c0_i32_0 : i32, i32
  }
  func.func @transform_5(%arg0: i32) -> (i32, i32) {
    %c0_i32 = arith.constant 0 : i32
    %c0_i32_0 = arith.constant 0 : i32
    %c0_i32_1 = arith.constant 0 : i32
    return %c0_i32, %c0_i32_0 : i32, i32
  }
  func.func @transform_6(%arg0: i32) -> (i32, i32) {
    %c0_i32 = arith.constant 0 : i32
    %c0_i32_0 = arith.constant 0 : i32
    %c0_i32_1 = arith.constant 0 : i32
    return %c0_i32, %c0_i32_0 : i32, i32
  }
  func.func @transform_7(%arg0: i32) -> (i32, i32) {
    %c0_i32 = arith.constant 0 : i32
    %c0_i32_0 = arith.constant 0 : i32
    %c0_i32_1 = arith.constant 0 : i32
    return %c0_i32, %c0_i32_0 : i32, i32
  }
  func.func @transform_8(%arg0: i32) -> (i32, i32) {
    %c0_i32 = arith.constant 0 : i32
    %c0_i32_0 = arith.constant 0 : i32
    %c0_i32_1 = arith.constant 0 : i32
    return %c0_i32, %c0_i32_0 : i32, i32
  }
  func.func @transform_9(%arg0: i32) -> (i32, i32) {
    %c0_i32 = arith.constant 0 : i32
    %c0_i32_0 = arith.constant 0 : i32
    return %arg0, %c0_i32 : i32, i32
  }
}

</mosaic_0001>

<bundles_post_ra>
// kernel: custom_decoder_forward.1
= control target key start
LH: loop header
LB: loop body
LE: loop exit
PB: predicated region body
PF: predicated region fallthrough
CT: control target
= control target key end

     0   :  { %s2021_s0 = inlined_call_operand.hbm [shape: f32[16,32], index: 0, kind: input, shape index: {}]   ;;  %s2022_s1 = inlined_call_operand.vmem [shape: bf16[32,128], index: 1, kind: input, shape index: {}]   ;;  %s2023_s2 = inlined_call_operand.hbm [shape: f32[1,128], index: 2, kind: input, shape index: {}]   ;;  %s2024_s3 = inlined_call_operand.hbm [shape: bf16[128,128], index: 3, kind: input, shape index: {}]   ;;  %s2025_s4 = inlined_call_operand.hbm [shape: f32[1,128], index: 4, kind: input, shape index: {}]   ;;  %s2026_s5 = inlined_call_operand.hbm [shape: bf16[128,128], index: 5, kind: input, shape index: {}]   ;;  %s2027_s6 = inlined_call_operand.hbm [shape: f32[1,128], index: 6, kind: input, shape index: {}]   ;;  %s2028_s7 = inlined_call_operand.hbm [shape: bf16[128,256], index: 7, kind: input, shape index: {}]   ;;  %s2029_s8 = inlined_call_operand.vmem [shape: f32[1,256], index: 8, kind: input, shape index: {}]   ;;  %s2030_s9 = inlined_call_operand.hbm [shape: f32[16,256], index: 9, kind: output, shape index: {}]  }
   0x1   :  { %2034 = sst [smem:[#allocation20_spill]] %s2023_s2 }
   0x2   :  { %2035 = sst [smem:[#allocation21_spill]] %s2024_s3 }
   0x3   :  { %14 = vsyncpa [#allocation3], 0 }
   0x4   :  { %16 = vsyncpa [#allocation3 + $0x1], 0 }
   0x5   :  { %17 = vsyncpa [#allocation6], 0 }
   0x6   :  { %18 = vsyncpa [#allocation9], 0 }
   0x7   :  { %19 = vsyncpa [#allocation12], 0 }
   0x8   :  { %20 = vsyncpa [#allocation4], 0 }
   0x9   :  { %22 = vsyncpa [#allocation4 + $0x1], 0  ;;  %s1654_s30 = smov 0   ;;  %s1656_s10 = smov 0  }
   0xa   :  { %s1658_s11 = smov 0   ;;  %s1660_s12 = smov 0  }
   0xb LB: > { %s1589_s13 = smov [#allocation5]   ;;  %s1675_s15 = sadd.s32 4294967295, %s1587_s12   ;;  %s1587_s12 = sphi %s1660_s12, %s2060_s12   ;;  %s1583_s11 = sphi %s1658_s11, %s2059_s11   ;;  %s1579_s10 = sphi %s1656_s10, %s2058_s10   ;;  %s1575_s30 = sphi %s1654_s30, %s2057_s30  }
   0xc   : > { %s269_s14 = sshll.u32 %s1589_s13, 4  ;;  %p1023_p0 = scmp.ge.s32.totalorder %s1587_s12, 1  ;;  %s1680_s14 = int_to_ptr.vmem [resolvable:$true] %s269_s14 }
   0xd   : > { %p2031_p1 = scmp.eq.s32.totalorder %s1675_s15, 0  ;;  %p253_p2 = scmp.lt.s32.totalorder %s1587_s12, 3 }
   0xe   : > { %s1590_s17 = smov [#allocation8]   ;;  %s1591_s19 = smov [#allocation11]  }
   0xf   : > { %p1682_p3 = pnand %p1023_p0, %p253_p2  ;;  %s293_s18 = sshll.u32 %s1590_s17, 4  ;;  %s1689_s18 = int_to_ptr.vmem [resolvable:$true] %s293_s18 }
  0x10   : > { %s317_s20 = sshll.u32 %s1591_s19, 4  ;;  %s1592_s22 = smov [#allocation7]   ;;  %s1697_s20 = int_to_ptr.vmem [resolvable:$true] %s317_s20 }
  0x11   : > { %s2036_s16 = scalar_select %p1682_p3, 1, 0 }
  0x12   : > { %p1183_p5 = pneg %p1682_p3  ;;  %s1699_s23 = sshll.u32 %s1592_s22, 4  ;;  %s280_s23 = int_to_ptr.vmem [resolvable:$true] %s1699_s23 }
  0x13   : > { %s2038_s2 = sld [smem:[#allocation20_spill]] }
  0x14   : > { %p1693_p6 = pnand %p1183_p5, %p2031_p1 }
  0x16   : > { %p1709_p8 = pneg %p1693_p6 }
  0x19   : > { %s1311_s26 = scalar_lea.hbm %s2038_s2, 16 }
  0x1a   : > { %p1312_p7 = scmp.ne.s32.totalorder %s2038_s2, %s1311_s26  ;;  %p1318_p11 = scmp.lt.u32.totalorder %s1311_s26, %s2038_s2 }
  0x1c   : > { %p1314_p9 = pnand %p1709_p8, %p1312_p7 }
  0x1e   : > { %p1315_p10 = pneg %p1314_p9 }
  0x20   : > { %p1320_p12 = pnand %p1318_p11, %p1315_p10 }
  0x22   : > { %1323 = shalt.err (!%p1320_p12)
}
  0x23   : > { %s1324_s19 = scalar_lea.vmem %s1680_s14, 16  ;;  %s1331_s22 = scalar_lea.vmem %s1680_s14, 32 }
  0x24   : > { %p1325_p13 = scmp.ne.s32.totalorder %s1680_s14, %s1324_s19  ;;  %p1332_p5 = scmp.lt.s32.totalorder %s1680_s14, %s1680_s14 }
  0x25   : > { %p1333_p7 = scmp.lt.s32.totalorder %s1331_s22, %s1324_s19 }
  0x26   : > { %p1327_p0 = pnand %p1325_p13, %p1709_p8 }
  0x27   : > { %p1334_p9 = por %p1333_p7, %p1332_p5 }
  0x28   : > { %p1328_p2 = pneg %p1327_p0 }
  0x2a   : > { %p1335_p4 = pnand %p1334_p9, %p1328_p2 }
  0x2c   : > { %1338 = shalt.err (!%p1335_p4)
}
  0x2d   : > { %1186 = dma.hbm_to_vmem [thread:$0]  (!%p1693_p6), %s2038_s2, 16, %s1680_s14, [#allocation6]  }
  0x2e   : > { %s1339_s28 = scalar_lea.hbm %s2025_s4, 16 }
  0x2f   : > { %p1340_p10 = scmp.ne.s32.totalorder %s2025_s4, %s1339_s28  ;;  %p1346_p4 = scmp.lt.u32.totalorder %s1339_s28, %s2025_s4 }
  0x31   : > { %p1342_p11 = pnand %p1340_p10, %p1709_p8 }
  0x33   : > { %p1343_p12 = pneg %p1342_p11 }
  0x35   : > { %p1348_p13 = pnand %p1346_p4, %p1343_p12 }
  0x37   : > { %1351 = shalt.err (!%p1348_p13)
}
  0x38   : > { %s1352_s14 = scalar_lea.vmem %s1689_s18, 16  ;;  %s1359_s24 = scalar_lea.vmem %s1689_s18, 32 }
  0x39   : > { %p1353_p0 = scmp.ne.s32.totalorder %s1689_s18, %s1352_s14  ;;  %p1360_p7 = scmp.lt.s32.totalorder %s1689_s18, %s1689_s18 }
  0x3a   : > { %p1361_p9 = scmp.lt.s32.totalorder %s1359_s24, %s1352_s14 }
  0x3b   : > { %p1355_p2 = pnand %p1353_p0, %p1709_p8 }
  0x3c   : > { %p1362_p10 = por %p1361_p9, %p1360_p7 }
  0x3d   : > { %p1356_p5 = pneg %p1355_p2 }
  0x3f   : > { %p1363_p11 = pnand %p1362_p10, %p1356_p5 }
  0x41   : > { %1366 = shalt.err (!%p1363_p11)
}
  0x42   : > { %1192 = dma.hbm_to_vmem [thread:$0]  (!%p1693_p6), %s2025_s4, 16, %s1689_s18, [#allocation9]  }
  0x43   : > { %s1367_s13 = scalar_lea.hbm %s2027_s6, 16 }
  0x44   : > { %p1368_p12 = scmp.ne.s32.totalorder %s2027_s6, %s1367_s13  ;;  %p1374_p0 = scmp.lt.u32.totalorder %s1367_s13, %s2027_s6 }
  0x46   : > { %p1370_p4 = pnand %p1368_p12, %p1709_p8 }
  0x48   : > { %p1371_p13 = pneg %p1370_p4 }
  0x4a   : > { %p1376_p2 = pnand %p1374_p0, %p1371_p13 }
  0x4c   : > { %1379 = shalt.err (!%p1376_p2)
}
  0x4d   : > { %s1380_s18 = scalar_lea.vmem %s1697_s20, 16  ;;  %s1387_s24 = scalar_lea.vmem %s1697_s20, 32 }
  0x4e   : > { %p1381_p5 = scmp.ne.s32.totalorder %s1697_s20, %s1380_s18  ;;  %p1388_p10 = scmp.lt.s32.totalorder %s1697_s20, %s1697_s20 }
  0x4f   : > { %p1389_p11 = scmp.lt.s32.totalorder %s1387_s24, %s1380_s18 }
  0x50   : > { %p1383_p7 = pnand %p1381_p5, %p1709_p8 }
  0x51   : > { %p1390_p12 = por %p1389_p11, %p1388_p10 }
  0x52   : > { %p1384_p9 = pneg %p1383_p7 }
  0x54   : > { %p1391_p4 = pnand %p1390_p12, %p1384_p9 }
  0x56   : > { %1394 = shalt.err (!%p1391_p4)
}
  0x57   : > { %1198 = dma.hbm_to_vmem [thread:$0]  (!%p1693_p6), %s2027_s6, 16, %s1697_s20, [#allocation12]  }
  0x58   : > { %s2040_s3 = sld [smem:[#allocation21_spill]] }
  0x5e   : > { %s1395_s13 = scalar_lea.hbm %s2040_s3, 1024 }
  0x5f   : > { %p1396_p13 = scmp.ne.s32.totalorder %s2040_s3, %s1395_s13  ;;  %p1402_p5 = scmp.lt.u32.totalorder %s1395_s13, %s2040_s3 }
  0x61   : > { %p1398_p0 = pnand %p1396_p13, %p1709_p8 }
  0x63   : > { %p1399_p2 = pneg %p1398_p0 }
  0x65   : > { %p1404_p7 = pnand %p1402_p5, %p1399_p2 }
  0x67   : > { %1407 = shalt.err (!%p1404_p7)
}
  0x68   : > { %s1408_s18 = scalar_lea.vmem %s280_s23, 1024  ;;  %p1416_p12 = scmp.lt.s32.totalorder %s280_s23, %s280_s23 }
  0x69   : > { %p1409_p9 = scmp.ne.s32.totalorder %s280_s23, %s1408_s18  ;;  %p1417_p4 = scmp.lt.s32.totalorder %s1408_s18, %s1408_s18 }
  0x6b   : > { %p1411_p10 = pnand %p1409_p9, %p1709_p8  ;;  %p1418_p1 = por %p1417_p4, %p1416_p12 }
  0x6d   : > { %p1412_p11 = pneg %p1411_p10 }
  0x6f   : > { %p1419_p3 = pnand %p1418_p1, %p1412_p11 }
  0x71   : > { %1422 = shalt.err (!%p1419_p3)
}
  0x72   : > { %s1593_s20 = smov 64   ;;  %s1594_s24 = smov 4  }
  0x73   : > { %1189 = dma.hbm_to_vmem [thread:$0]  (!%p1693_p6), %s2040_s3, 1024, %s280_s23, [#allocation6], %s1593_s20, %s1593_s20, %s1594_s24  }
  0x74   : > { %s1595_s27 = smov [#allocation10]   ;;  %s1596_s13 = smov [#allocation13]  }
  0x75   : > { %s303_s28 = sshll.u32 %s1595_s27, 4  ;;  %s327_s17 = sshll.u32 %s1596_s13, 4  ;;  %s304_s28 = int_to_ptr.vmem [resolvable:$true] %s303_s28  ;;  %s1798_s17 = int_to_ptr.vmem [resolvable:$true] %s327_s17 }
  0x76   : > { %s1423_s14 = scalar_lea.hbm %s2026_s5, 1024 }
  0x77   : > { %p1424_p1 = scmp.ne.s32.totalorder %s2026_s5, %s1423_s14  ;;  %p1430_p0 = scmp.lt.u32.totalorder %s1423_s14, %s2026_s5 }
  0x79   : > { %p1426_p3 = pnand %p1424_p1, %p1709_p8 }
  0x7b   : > { %p1427_p13 = pneg %p1426_p3 }
  0x7d   : > { %p1432_p2 = pnand %p1430_p0, %p1427_p13 }
  0x7f   : > { %1435 = shalt.err (!%p1432_p2)
}
  0x80   : > { %s1436_s26 = scalar_lea.vmem %s304_s28, 1024  ;;  %p1444_p10 = scmp.lt.s32.totalorder %s304_s28, %s304_s28 }
  0x81   : > { %p1437_p5 = scmp.ne.s32.totalorder %s304_s28, %s1436_s26  ;;  %p1445_p11 = scmp.lt.s32.totalorder %s1436_s26, %s1436_s26 }
  0x83   : > { %p1439_p7 = pnand %p1437_p5, %p1709_p8  ;;  %p1446_p12 = por %p1445_p11, %p1444_p10 }
  0x85   : > { %p1440_p9 = pneg %p1439_p7 }
  0x87   : > { %p1447_p4 = pnand %p1446_p12, %p1440_p9 }
  0x89   : > { %1450 = shalt.err (!%p1447_p4)
}
  0x8a   : > { %1195 = dma.hbm_to_vmem [thread:$0]  (!%p1693_p6), %s2026_s5, 1024, %s304_s28, [#allocation9], %s1593_s20, %s1593_s20, %s1594_s24  }
  0x8b   : > { %s1451_s22 = scalar_lea.hbm %s2028_s7, 2048 }
  0x8c   : > { %p1452_p1 = scmp.ne.s32.totalorder %s2028_s7, %s1451_s22  ;;  %p1458_p0 = scmp.lt.u32.totalorder %s1451_s22, %s2028_s7 }
  0x8e   : > { %p1454_p3 = pnand %p1452_p1, %p1709_p8 }
  0x90   : > { %p1455_p13 = pneg %p1454_p3 }
  0x92   : > { %p1460_p2 = pnand %p1458_p0, %p1455_p13 }
  0x94   : > { %1463 = shalt.err (!%p1460_p2)
}
  0x95   : > { %s1464_s20 = scalar_lea.vmem %s1798_s17, 2048  ;;  %p1472_p10 = scmp.lt.s32.totalorder %s1798_s17, %s1798_s17 }
  0x96   : > { %p1465_p5 = scmp.ne.s32.totalorder %s1798_s17, %s1464_s20  ;;  %p1473_p11 = scmp.lt.s32.totalorder %s1464_s20, %s1464_s20 }
  0x98   : > { %p1467_p7 = pnand %p1465_p5, %p1709_p8  ;;  %p1474_p12 = por %p1473_p11, %p1472_p10 }
  0x9a   : > { %p1468_p9 = pneg %p1467_p7 }
  0x9c   : > { %p1475_p4 = pnand %p1474_p12, %p1468_p9 }
  0x9e   : > { %1478 = shalt.err (!%p1475_p4)
}
  0x9f   : > { %s1597_s24 = smov 128   ;;  %s1598_s29 = smov 8  }
  0xa0   : > { %1201 = dma.hbm_to_vmem [thread:$0]  (!%p1693_p6), %s2028_s7, 2048, %s1798_s17, [#allocation12], %s1597_s24, %s1597_s24, %s1598_s29  }
  0xa1   : > { %s1022_s2 = sadd.s32 4294967294, %s1587_s12   ;;  %s1843_s27 = sadd.s32 1, %s1587_s12  }
  0xa2   : > { %s32_s13 = ssub.s32 %s1587_s12, %s1843_s27  ;;  %s35_s19 = sadd.s32 1, %s1583_s11 }
  0xa3   : > { %p33_p8 = scmp.eq.s32.totalorder %s32_s13, 0  ;;  %p42_p1 = scmp.ne.s32.totalorder %s1583_s11, %s1579_s10 }
  0xa4   : > { %p43_p3 = scmp.eq.s32.totalorder %s1587_s12, 0  ;;  %p48_p13 = scmp.ne.s32.totalorder %s1579_s10, %s1575_s30 }
  0xa5   : > { %s1854_s22 = scalar_select %p33_p8, %s1583_s11, %s35_s19  }
  0xa6   : > { %p1856_p0 = por %p43_p3, %p42_p1  ;;  %p2042_p2 = scmp.eq.s32.totalorder %s1675_s15, 0 }
  0xa7   : > { %p240_p5 = scmp.eq.s32.totalorder %s1675_s15, 1  ;;  %p246_p7 = scmp.eq.s32.totalorder %s1022_s2, 1 }
  0xa8   : > { %p1862_p6 = por %p2042_p2, %p48_p13  ;;  %p1216_p9 = scmp.lt.s32.totalorder %s1587_s12, 2 }
  0xa9   : > { %s344_s14 = sand.u32 1, %s1583_s11   ;;  %p1869_p10 = por %p240_p5, %p42_p1 }
  0xaa   : > { %p1873_p11 = por %p246_p7, %p48_p13  ;;  %s1031_s23 = sshll.u32 %s344_s14, 3 }
  0xab   : > { %s2044_s18 = scalar_select %p1869_p10, 1, 0 }
  0xac   : > { %s2045_s25 = scalar_select %p1873_p11, 1, 0 }
  0xad   : > { %s1032_s20 = sshll.u32 %s1587_s12, 7  ;;  %s348_s26 = scalar_lea.vmem [#allocation2], %s1031_s23 }
  0xae   : > { %s1881_s28 = scalar_lea.hbm %s2021_s0, %s1032_s20  ;;  %s355_s2 = sshll.u32 %s348_s26, 4  ;;  %s1883_s2 = int_to_ptr.vmem [resolvable:$true] %s355_s2 }
  0xaf   : > { %p1887_p12 = pnand %p1216_p9, %p1856_p0  ;;  %s345_s19 = scalar_lea.sflag [#allocation3], %s344_s14 }
  0xb0   : > { %s1479_s3 = scalar_lea.hbm %s1881_s28, 128  ;;  %s1484_s24 = scalar_lea.hbm %s2021_s0, 256 }
  0xb1   : > { %p1480_p4 = scmp.ne.s32.totalorder %s1881_s28, %s1479_s3  ;;  %p1481_p8 = pneg %p1887_p12 }
  0xb2   : > { %p1485_p13 = scmp.lt.u32.totalorder %s1881_s28, %s2021_s0  ;;  %p1486_p0 = scmp.lt.u32.totalorder %s1484_s24, %s1479_s3 }
  0xb3   : > { %p1482_p1 = pnand %p1481_p8, %p1480_p4  ;;  %p1488_p5 = scmp.lt.u32.totalorder %s1479_s3, %s1881_s28 }
  0xb4   : > { %p1487_p2 = por %p1486_p0, %p1485_p13 }
  0xb5   : > { %p1483_p3 = pneg %p1482_p1 }
  0xb6   : > { %p1489_p7 = por %p1488_p5, %p1487_p2 }
  0xb8   : > { %p1490_p9 = pnand %p1489_p7, %p1483_p3 }
  0xba   : > { %1493 = shalt.err (!%p1490_p9)
}
  0xbb   : > { %s1494_s14 = scalar_lea.vmem %s1883_s2, 128  ;;  %s1599_s26 = smov [#allocation2]  }
  0xbc   : > { %p1495_p4 = scmp.ne.s32.totalorder %s1883_s2, %s1494_s14  ;;  %s1499_s23 = sshll.u32 %s1599_s26, 4  ;;  %s1500_s23 = int_to_ptr.vmem [resolvable:$false] %s1499_s23 }
  0xbd   : > { %s1501_s20 = scalar_lea.vmem %s1500_s23, 256  ;;  %p1502_p10 = scmp.lt.s32.totalorder %s1883_s2, %s1500_s23 }
  0xbe   : > { %p1497_p1 = pnand %p1495_p4, %p1481_p8  ;;  %p1503_p13 = scmp.lt.s32.totalorder %s1501_s20, %s1494_s14 }
  0xc0   : > { %p1498_p11 = pneg %p1497_p1  ;;  %p1504_p0 = por %p1503_p13, %p1502_p10 }
  0xc2   : > { %p1505_p2 = pnand %p1504_p0, %p1498_p11 }
  0xc4   : > { %1508 = shalt.err (!%p1505_p2)
}
  0xc5   : > { %1205 = dma.hbm_to_vmem [thread:$0]  (!%p1887_p12), %s1881_s28, 128, %s1883_s2, %s345_s19  }
  0xc6   : > { %p2047_p3 = scmp.ne.s32.totalorder %s2036_s16, 0 }
  0xc7   : > { %s1919_s3 = sand.u32 (!%p2047_p3), 1, %s1579_s10  }
  0xc8   : > { %364 = sbr.rel (%p2047_p3) target bundleno = 1113 (0x459), region = 56  ;;  %s1034_s24 = sshll.u32 (!%p2047_p3), %s1919_s3, 3 }
  0xc9   : > { %s367_s21 = scalar_lea.sflag (!%p2047_p3), [#allocation3], %s1919_s3  ;;  %s370_s29 = scalar_lea.vmem (!%p2047_p3), [#allocation2], %s1034_s24 }
  0xcf   : > { %1554 = dma.done.wait (%p1862_p6), %s367_s21, 128  }
  0xd0   : > { %1556 = vsyncadd (%p1862_p6), %s367_s21, 4294967168  ;;  %p2048_p10 = scmp.eq.s32.totalorder %s1675_s15, 0 }
  0xd2   : > { %1558 = dma.done.wait (%p2048_p10), [#allocation6], 1040   ;;  %p2049_p11 = pmov %p2048_p10 }
  0xd3   : > { %p2050_p12 = pmov %p2048_p10 }
  0xd4   : > { %1560 = vsyncadd (%p2049_p11), [#allocation6], 4294966256 }
  0xd5   : > { %1562 = dma.done.wait (%p2050_p12), [#allocation9], 1040   ;;  %p2051_p8 = pmov %p2048_p10 }
  0xd7   : > { %1564 = vsyncadd (%p2051_p8), [#allocation9], 4294966256  ;;  %p2052_p5 = pmov %p2051_p8 }
  0xd9   : > { %1566 = dma.done.wait (%p2052_p5), [#allocation12], 2064   ;;  %p2053_p7 = pmov %p2052_p5 }
  0xda   : > { %v1600_v0 = vmov 0.0   ;;  %vm1601_vm0 = vmmov 0   ;;  %v1269_v1 = vld [vmem:[%s2022_s1] sm:$0xff]   ;;  %v1270_v2 = vld [vmem:[%s2022_s1 + $0x8] sm:$0xff]   ;;  %v1271_v4 = vld [vmem:[#allocation7] sm:$0xff]   ;;  %vm455_vm1 = vcmask 261120   ;;  %v745_v62 = vlaneseq }
  0xdb   : > { %1568 = vsyncadd (%p2053_p7), [#allocation12], 4294965232  ;;  %1107 = vmatprep.subr.bf16.mxu0 %v1600_v0  ;;  %1111 = vmatprep.mubr.msk.bf16.mxu0 %vm1601_vm0, %v1600_v0  ;;  %v430_v3 = vld [vmem:[%s370_s29] sm:$0xff]  ;;  %v1275_v9 = vld [vmem:[#allocation7 + $0x20] sm:$0xff]   ;;  %v1602_v53 = vmov 0   ;;  %s1041_s14 = sshll.u32 %s1919_s3, 4 }
  0xdc   : > { %1115 = vmatprep.subr.bf16.mxu1 %v1600_v0  ;;  %1131 = vmatprep.mubr.msk.bf16.mxu1 %vm1601_vm0, %v1600_v0  ;;  %v431_v5 = vpack.c.bf16 %v430_v3, %v430_v3  ;;  %v1272_v6 = vld [vmem:[#allocation7 + $0x8] sm:$0xff]   ;;  %v1273_v7 = vld [vmem:[#allocation7 + $0x10] sm:$0xff]   ;;  %v1274_v8 = vld [vmem:[#allocation7 + $0x18] sm:$0xff]   ;;  %v746_v63 = vshrl.u32 %v745_v62, 7  ;;  %s1085_s26 = sshll.u32 %s1675_s15, 8  ;;  %s428_s23 = scalar_lea.vmem [#allocation14], %s1041_s14 }
  0xdd   : > { %1108 = vmatpush3.bf16.msra.mxu0 %v1269_v1  ;;  %1116 = vmatpush3.bf16.msra.mxu1 %v1271_v4  ;;  %v1276_v10 = vld [vmem:[#allocation7 + $0x28] sm:$0xff]   ;;  %v1277_v11 = vld [vmem:[#allocation7 + $0x30] sm:$0xff]   ;;  %v1278_v12 = vld [vmem:[#allocation7 + $0x38] sm:$0xff]   ;;  %s895_s20 = sshll.u32 %s428_s23, 4  ;;  %s1977_s29 = scalar_lea.hbm %s2030_s9, %s1085_s26  ;;  %s1979_s20 = int_to_ptr.vmem [resolvable:$true] %s895_s20 }
  0xde   : > { %1109 = vmatprep.subr.bf16.mxu0 %v1600_v0  ;;  %1117 = vmatprep.subr.bf16.mxu1 %v1600_v0  ;;  %v1279_v13 = vld [vmem:[#allocation10] sm:$0xff]   ;;  %v1280_v14 = vld [vmem:[#allocation10 + $0x8] sm:$0xff]   ;;  %v1281_v15 = vld [vmem:[#allocation10 + $0x10] sm:$0xff]   ;;  %s881_s15 = scalar_lea.sflag [#allocation4], %s1919_s3  ;;  %s1509_s16 = scalar_lea.vmem %s1979_s20, 256 }
  0xdf   : > { %v1282_v16 = vld [vmem:[#allocation10 + $0x18] sm:$0xff]   ;;  %v1283_v17 = vld [vmem:[#allocation10 + $0x20] sm:$0xff]   ;;  %v1284_v18 = vld [vmem:[#allocation10 + $0x28] sm:$0xff]   ;;  %p1510_p6 = scmp.ne.s32.totalorder %s1979_s20, %s1509_s16  ;;  %p2054_p9 = scmp.ne.s32.totalorder %s2044_s18, 0 }
  0xe0   : > { %v1042_v19 = vld [vmem:[#allocation5] ss:$0 sm:$0xff]  ;;  %v1285_v27 = vld [vmem:[#allocation10 + $0x30] sm:$0xff]   ;;  %v1287_v29 = vld [vmem:[#allocation13] ss:$8 sps:$4 sm:$0xff]   ;;  %s1603_s17 = smov [#allocation14]  }
  0xe1   : > { %1110 = vmatpush3.bf16.msra.mxu0 %v1270_v2  ;;  %1118 = vmatpush3.bf16.msra.mxu1 %v1272_v6  ;;  %v1286_v28 = vld [vmem:[#allocation10 + $0x38] sm:$0xff]   ;;  %v1289_v30 = vld [vmem:[#allocation13 + $0x4] ss:$8 sps:$4 sm:$0xff]   ;;  %v1293_v34 = vld [vmem:[#allocation13 + $0x20] ss:$8 sps:$4 sm:$0xff]   ;;  %v751_v2 = vsub.s32 1, %v746_v63  ;;  %p1511_p4 = pnand %p1510_p6, %p2054_p9 }
  0xe2   : > { %1135 = vmatprep.subr.bf16.mxu0 %v1600_v0  ;;  %1119 = vmatprep.subr.bf16.mxu1 %v1600_v0  ;;  %v1292_v31 = vld [vmem:[#allocation13 + $0x14] ss:$8 sps:$4 sm:$0xff]   ;;  %v1290_v32 = vld [vmem:[#allocation13 + $0x10] ss:$8 sps:$4 sm:$0xff]   ;;  %v1295_v33 = vld [vmem:[#allocation13 + $0x24] ss:$8 sps:$4 sm:$0xff]  }
  0xe3   : > { %v1298_v35 = vld [vmem:[#allocation13 + $0x34] ss:$8 sps:$4 sm:$0xff]   ;;  %v1296_v36 = vld [vmem:[#allocation13 + $0x30] ss:$8 sps:$4 sm:$0xff]   ;;  %v1301_v37 = vld [vmem:[#allocation13 + $0x44] ss:$8 sps:$4 sm:$0xff]   ;;  %p1512_p1 = pneg %p1511_p4 }
  0xe4   : > { %1112 = vmatmul.mubr.msk.bf16.vlgmr.msra.gmra.mrb[0].mxu0 %vm455_vm1, %v431_v5  ;;  %v1299_v38 = vld [vmem:[#allocation13 + $0x40] ss:$8 sps:$4 sm:$0xff]   ;;  %v1304_v39 = vld [vmem:[#allocation13 + $0x54] ss:$8 sps:$4 sm:$0xff]   ;;  %v1302_v40 = vld [vmem:[#allocation13 + $0x50] ss:$8 sps:$4 sm:$0xff]  }
  0xe5   : > { %1151 = vmatprep.mubr.msk.bf16.mxu0 %vm1601_vm0, %v1600_v0  ;;  %1120 = vmatpush3.bf16.msra.mxu1 %v1273_v7  ;;  %v1307_v41 = vld [vmem:[#allocation13 + $0x64] ss:$8 sps:$4 sm:$0xff]   ;;  %v1305_v42 = vld [vmem:[#allocation13 + $0x60] ss:$8 sps:$4 sm:$0xff]   ;;  %v1046_v43 = vld [vmem:[#allocation8] ss:$0 sm:$0xff] }
  0xe6   : > { %1121 = vmatprep.subr.bf16.mxu1 %v1600_v0  ;;  %1136 = vmatpush3.bf16.msra.mxu0 %v1279_v13  ;;  %v1310_v51 = vld [vmem:[#allocation13 + $0x74] ss:$8 sps:$4 sm:$0xff]   ;;  %v1308_v52 = vld [vmem:[#allocation13 + $0x70] ss:$8 sps:$4 sm:$0xff]   ;;  %v743_v1 = vld [vmem:[%s2029_s8] sm:$0x3] }
  0xe7   : > { %1137 = vmatprep.subr.bf16.mxu0 %v1600_v0  ;;  %v1055_v54 = vld [vmem:[#allocation11] ss:$0 sm:$0xff]  ;;  %v752_v4 = vrot.slane %v743_v1, %v751_v2  ;;  %s1513_s28 = sshll.u32 %s1603_s17, 4  ;;  %s1514_s28 = int_to_ptr.vmem [resolvable:$false] %s1513_s28 }
  0xe8   : > { %s1515_s2 = scalar_lea.vmem %s1514_s28, 512  ;;  %p1516_p13 = scmp.lt.s32.totalorder %s1979_s20, %s1514_s28 }
  0xe9   : > { %1122 = vmatpush3.bf16.msra.mxu1 %v1274_v8  ;;  %p1517_p0 = scmp.lt.s32.totalorder %s1515_s2, %s1509_s16 }
  0xea   : > { %1123 = vmatprep.subr.bf16.mxu1 %v1600_v0  ;;  %1138 = vmatpush3.bf16.msra.mxu0 %v1280_v14 }
  0xeb   : > { %1139 = vmatprep.subr.bf16.mxu0 %v1600_v0  ;;  %p1518_p2 = por %p1517_p0, %p1516_p13 }
  0xed   : > { %1124 = vmatpush3.bf16.msra.mxu1 %v1275_v9  ;;  %p1519_p3 = pnand %p1518_p2, %p1512_p1 }
  0xee   : > { %1125 = vmatprep.subr.bf16.mxu1 %v1600_v0  ;;  %1140 = vmatpush3.bf16.msra.mxu0 %v1281_v15 }
  0xef   : > { %1141 = vmatprep.subr.bf16.mxu0 %v1600_v0 }
  0xf1   : > { %1126 = vmatpush3.bf16.msra.mxu1 %v1276_v10 }
  0xf2   : > { %1127 = vmatprep.subr.bf16.mxu1 %v1600_v0  ;;  %1142 = vmatpush3.bf16.msra.mxu0 %v1282_v16 }
  0xf3   : > { %1143 = vmatprep.subr.bf16.mxu0 %v1600_v0 }
  0xf5   : > { %1128 = vmatpush3.bf16.msra.mxu1 %v1277_v11 }
  0xf6   : > { %1129 = vmatprep.subr.bf16.mxu1 %v1600_v0  ;;  %1144 = vmatpush3.bf16.msra.mxu0 %v1283_v17 }
  0xf7   : > { %1145 = vmatprep.subr.bf16.mxu0 %v1600_v0 }
  0xf9   : > { %1130 = vmatpush3.bf16.msra.mxu1 %v1278_v12 }
  0xfa   : > { %1146 = vmatpush3.bf16.msra.mxu0 %v1284_v18  ;;  %835 = vmatprep.subr.bf16.mxu1 %v1289_v30 }
  0xfb   : > { %1147 = vmatprep.subr.bf16.mxu0 %v1600_v0 }
  0xfe   : > { %1148 = vmatpush3.bf16.msra.mxu0 %v1285_v27 }
  0xff   : > { %1149 = vmatprep.subr.bf16.mxu0 %v1600_v0  ;;  %v747_v0 = vsub.s32 0, %v746_v63 }
 0x101   : > { %v748_v3 = vrot.slane %v743_v1, %v747_v0 }
 0x102   : > { %1150 = vmatpush3.bf16.msra.mxu0 %v1286_v28 }
 0x1b7   : > { %v493_v20 = vpop.f32.mrb[0].mxu0 }
 0x1b8   : > { %v494_v21 = vadd.f32 %v1042_v19, %v493_v20  ;;  %v1113_v22 = vpop.f32.mrb[1].mxu0 }
 0x1b9   : > { %v496_v23 = vpop.f32.mrb[2].mxu0 }
 0x1ba   : > { %v499_v24 = vmax.f32 %v494_v21, 0.0  ;;  %v1114_v25 = vpop.f32.mrb[3].mxu0 }
 0x1bc   : > { %v500_v26 = vpack.c.bf16 %v499_v24, %v499_v24 }
 0x1be   : > { %1132 = vmatmul.mubr.bf16.vlgmr.msra.gmra.mrb[0].mxu1 %v500_v26 }
 0x1bf   : > { %836 = vmatpush1.bf16.msra.mxu1 %v1287_v29  ;;  %867 = vmatprep.mubr.bf16.mxu1 %v1602_v53 }
 0x1c0   : > { %837 = vmatprep.subr.bf16.mxu1 %v1292_v31 }
 0x1c3   : > { %838 = vmatpush1.bf16.msra.mxu1 %v1290_v32 }
 0x1c4   : > { %839 = vmatprep.subr.bf16.mxu1 %v1295_v33 }
 0x1c7   : > { %840 = vmatpush1.bf16.msra.mxu1 %v1293_v34 }
 0x1c8   : > { %841 = vmatprep.subr.bf16.mxu1 %v1298_v35 }
 0x1cb   : > { %842 = vmatpush1.bf16.msra.mxu1 %v1296_v36 }
 0x1cc   : > { %843 = vmatprep.subr.bf16.mxu1 %v1301_v37 }
 0x1cf   : > { %844 = vmatpush1.bf16.msra.mxu1 %v1299_v38 }
 0x1d0   : > { %845 = vmatprep.subr.bf16.mxu1 %v1304_v39 }
 0x1d3   : > { %846 = vmatpush1.bf16.msra.mxu1 %v1302_v40 }
 0x1d4   : > { %847 = vmatprep.subr.bf16.mxu1 %v1307_v41 }
 0x1d7   : > { %848 = vmatpush1.bf16.msra.mxu1 %v1305_v42 }
 0x1d8   : > { %849 = vmatprep.subr.bf16.mxu1 %v1310_v51 }
 0x1db   : > { %850 = vmatpush1.bf16.msra.mxu1 %v1308_v52 }
 0x291   : > { %v606_v44 = vpop.f32.mrb[0].mxu1 }
 0x292   : > { %v607_v45 = vadd.f32 %v1046_v43, %v606_v44  ;;  %v1133_v46 = vpop.f32.mrb[1].mxu1 }
 0x293   : > { %v609_v47 = vpop.f32.mrb[2].mxu1 }
 0x294   : > { %v612_v48 = vmax.f32 %v607_v45, 0.0  ;;  %v1134_v49 = vpop.f32.mrb[3].mxu1 }
 0x296   : > { %v613_v50 = vpack.c.bf16 %v612_v48, %v612_v48 }
 0x298   : > { %1152 = vmatmul.mubr.bf16.vlgmr.msra.gmra.mrb[4].mxu0 %v613_v50 }
 0x36b   : > { %v719_v55 = vpop.f32.mrb[4].mxu0 }
 0x36c   : > { %v720_v56 = vadd.f32 %v1055_v54, %v719_v55  ;;  %v1153_v57 = vpop.f32.mrb[5].mxu0 }
 0x36d   : > { %v722_v58 = vpop.f32.mrb[6].mxu0 }
 0x36e   : > { %v725_v59 = vmax.f32 %v720_v56, 0.0  ;;  %v1154_v60 = vpop.f32.mrb[7].mxu0 }
 0x370   : > { %v726_v61 = vpack.c.bf16 %v725_v59, %v725_v59 }
 0x372   : > { %868 = vmatmul.mubr.bf16.vlgmr.msra.gmra.mrb[4].mxu1 %v726_v61 }
 0x445   : > { %v869_v5 = vpop.f32.mrb[4].mxu1 }
 0x446   : > { %v870_v6 = vadd.f32 %v869_v5, %v748_v3  ;;  %v871_v7 = vpop.f32.mrb[5].mxu1 }
 0x447   : > { %v872_v8 = vadd.f32 %v871_v7, %v752_v4  ;;  %v873_v9 = vpop.f32.mrb[6].mxu1 }
 0x448   : > { %v876_v10 = vmax.f32 %v870_v6, 0.0  ;;  %v874_v11 = vpop.f32.mrb[7].mxu1 }
 0x449   : > { %v877_v12 = vmax.f32 %v872_v8, 0.0 }
 0x44a   : > { %878 = vst [vmem:[%s428_s23] sm:$0xff] %v876_v10 }
 0x44b   : > { %879 = vst [vmem:[%s428_s23 + $0x8] sm:$0xff] %v877_v12 }
 0x44c   : > { %1522 = shalt.err (!%p1519_p3)
}
 0x44d   : > { %s1523_s3 = scalar_lea.hbm %s1977_s29, 256  ;;  %s1527_s14 = scalar_lea.hbm %s2030_s9, 512 }
 0x44e   : > { %p1524_p10 = scmp.ne.s32.totalorder %s1977_s29, %s1523_s3  ;;  %p1528_p8 = scmp.lt.u32.totalorder %s1977_s29, %s2030_s9 }
 0x44f   : > { %p1529_p5 = scmp.lt.u32.totalorder %s1527_s14, %s1523_s3  ;;  %p1531_p6 = scmp.lt.u32.totalorder %s1523_s3, %s1977_s29 }
 0x450   : > { %p1525_p11 = pnand %p1524_p10, %p2054_p9 }
 0x451   : > { %p1530_p7 = por %p1529_p5, %p1528_p8 }
 0x452   : > { %p1526_p12 = pneg %p1525_p11 }
 0x453   : > { %p1532_p4 = por %p1531_p6, %p1530_p7 }
 0x455   : > { %p1533_p1 = pnand %p1532_p4, %p1526_p12 }
 0x457   : > { %1536 = shalt.err (!%p1533_p1)
}
 0x458   : > { %1181 = dma.vmem_to_hbm [thread:$0]  (%p2054_p9), %s1979_s20, 256, %s1977_s29, %s881_s15  }
 0x459 PF: > { %s907_s24 = sand.u32 1, %s1575_s30   ;;  %p2055_p13 = scmp.ne.s32.totalorder %s2045_s25, 0 }
 0x45a   : > { %p2056_p0 = scmp.ge.s32.totalorder %s1587_s12, 2  ;;  %s908_s21 = scalar_lea.sflag [#allocation4], %s907_s24 }
 0x45c   : > { %p1207_p2 = pnand %p2056_p0, %p2055_p13 }
 0x45e   : > { %1570 = dma.done.wait (!%p1207_p2), %s908_s21, 256  }
 0x45f   : > { %1572 = vsyncadd (!%p1207_p2), %s908_s21, 4294967040  ;;  %p25_p3 = scmp.ge.s32.totalorder %s1843_s27, 4   ;;  %s2057_s30 = smov %s1579_s10 }
 0x460   : > { %s2058_s10 = smov %s1583_s11  ;;  %s2059_s11 = smov %s1854_s22 }
 0x461   : > { %s2060_s12 = smov %s1843_s27  ;;  %27 = sbr.rel (!%p25_p3) target bundleno = 11 (0xb), region = 125 }
 0x468   :  { %913 = vsyncpa [#allocation3], 1 }
 0x469   :  { %915 = vsyncpa [#allocation3 + $0x1], 1 }
 0x46a   :  { %916 = vsyncpa [#allocation6], 1 }
 0x46b   :  { %917 = vsyncpa [#allocation9], 1 }
 0x46c   :  { %918 = vsyncpa [#allocation12], 1 }
 0x46d   :  { %919 = vsyncpa [#allocation4], 1 }
 0x46e   :  { %921 = vsyncpa [#allocation4 + $0x1], 1 }

</bundles_post_ra>
